<compile_context>
chip_gen: v7x
topology: tpu7x:2x2x1
jax: 0.10.0
libtpu: 0.0.40
codegen_flags: <defaults>
</compile_context>

<pallas_src>
import functools

import jax
import jax.numpy as jnp
from jax import lax
from jax.experimental import pallas as pl
from jax.experimental.pallas import tpu as pltpu


def _cosine_loss_kernel(f1_ref, f2_ref, out_ref, acc_ref, *, eps, n_valid, tile_n):
    # f1_ref / f2_ref: (1, C, TN) blocks in VMEM.
    # out_ref:  (1, 1, 128) per-batch partial-sum block.
    # acc_ref:  (1, TN) f32 running per-lane loss accumulator (per batch).
    j = pl.program_id(1)

    @pl.when(j == 0)
    def _():
        acc_ref[...] = jnp.zeros_like(acc_ref)

    a = f1_ref[...].astype(jnp.float32)            # (1, C, TN)
    b = f2_ref[...].astype(jnp.float32)

    dot = jnp.sum(a * b, axis=1)                   # (1, TN)
    sq1 = jnp.sum(a * a, axis=1)                   # (1, TN)
    sq2 = jnp.sum(b * b, axis=1)                   # (1, TN)

    eps_f = jnp.float32(eps)
    # dot / max(sqrt(sq1)*sqrt(sq2), eps)  ==  dot * rsqrt(max(sq1*sq2, eps^2))
    inv_norm = lax.rsqrt(jnp.maximum(sq1 * sq2, eps_f * eps_f))
    loss = 1.0 - dot * inv_norm                    # (1, TN)

    # Mask columns past the true extent (partial last tile).
    col = j * tile_n + lax.broadcasted_iota(jnp.int32, (1, tile_n), 1)
    loss = jnp.where(col < n_valid, loss, 0.0)

    acc_ref[...] += loss

    @pl.when(j == pl.num_programs(1) - 1)
    def _():
        s = jnp.sum(acc_ref[...])                  # one XLU reduce per batch
        out_ref[...] = jnp.broadcast_to(s, (1, 1, 128))


def _pick_tile_n(n, c, itemsize):
    """Lane-tile size: multiple of 128 (or full extent if n <= 128), sized so
    per-block VMEM stays modest even on v5e's 16 MiB scoped default."""
    del itemsize  # temporaries are f32 regardless of input dtype
    if n <= 128:
        return n
    budget = 2 * 1024 * 1024                       # one f32 (C, TN) temp <= 2 MiB
    tn = budget // (4 * c)
    tn = max(128, min(tn, 2048))
    tn = (tn // 128) * 128
    n_padded = pl.cdiv(n, 128) * 128
    return min(tn, n_padded)


def cosine_loss(f1, f2, dim=1, eps=1e-8):
    """JAX/Pallas equivalent of CosineLoss(dim, eps).forward(f1, f2)."""
    assert f1.shape == f2.shape, "f1 and f2 must have the same shape"
    shape = f1.shape
    dim = dim % len(shape)
    c = shape[dim]
    b_eff = 1
    for s in shape[:dim]:
        b_eff *= s
    n_eff = 1
    for s in shape[dim + 1:]:
        n_eff *= s

    # Free (contiguous) reshapes -- no transpose, no extra HBM traffic.
    f1r = f1.reshape(b_eff, c, n_eff)
    f2r = f2.reshape(b_eff, c, n_eff)

    tn = _pick_tile_n(n_eff, c, f1r.dtype.itemsize)
    nt = pl.cdiv(n_eff, tn)

    kernel = functools.partial(
        _cosine_loss_kernel, eps=eps, n_valid=n_eff, tile_n=tn)

    partials = pl.pallas_call(
        kernel,
        out_shape=jax.ShapeDtypeStruct((b_eff, 1, 128), jnp.float32),
        grid_spec=pltpu.PrefetchScalarGridSpec(
            num_scalar_prefetch=0,
            grid=(b_eff, nt),
            in_specs=[
                pl.BlockSpec((1, c, tn), lambda b, j: (b, 0, j)),
                pl.BlockSpec((1, c, tn), lambda b, j: (b, 0, j)),
            ],
            out_specs=pl.BlockSpec((1, 1, 128), lambda b, j: (b, 0, 0)),
            scratch_shapes=[pltpu.VMEM((1, tn), jnp.float32)],
        ),
        compiler_params=pltpu.CompilerParams(
            dimension_semantics=("parallel", "arbitrary"),
        ),
    )(f1r, f2r)

    total = jnp.sum(partials[:, 0, 0])
    return total / jnp.float32(b_eff * n_eff)


def _reference_cosine_loss(f1, f2, dim=1, eps=1e-8):
    a = f1.astype(jnp.float32)
    b = f2.astype(jnp.float32)
    dot = jnp.sum(a * b, axis=dim)
    n1 = jnp.sqrt(jnp.sum(a * a, axis=dim))
    n2 = jnp.sqrt(jnp.sum(b * b, axis=dim))
    cos = dot / jnp.maximum(n1 * n2, eps)
    return jnp.mean(1.0 - cos)


if __name__ == "__main__":
    key = jax.random.PRNGKey(0)
    k1, k2 = jax.random.split(key)
    # NCHW inputs, as the PyTorch module would see from a conv feature map.
    f1 = jax.random.normal(k1, (2, 4, 16, 16), dtype=jnp.float32)
    f2 = jax.random.normal(k2, (2, 4, 16, 16), dtype=jnp.float32)

    loss = cosine_loss(f1, f2, dim=1, eps=1e-8)
    loss = jax.block_until_ready(loss)

    ref = _reference_cosine_loss(f1, f2, dim=1, eps=1e-8)
    assert jnp.allclose(loss, ref, atol=1e-5, rtol=1e-5), (loss, ref)

    print("KERNEL_OK")
</pallas_src>

<mosaic_0001>
module attributes {stable_mosaic.version = 11 : i64} {
  func.func @_cosine_loss_kernel(%arg0: i32, %arg1: i32, %arg2: memref<1x4x256xf32, #tpu.memory_space<vmem>>, %arg3: memref<1x4x256xf32, #tpu.memory_space<vmem>>, %arg4: memref<1x1x128xf32, #tpu.memory_space<vmem>>, %arg5: memref<1x256xf32, #tpu.memory_space<vmem>>) attributes {dimension_semantics = [#tpu.dimension_semantics<parallel>, #tpu.dimension_semantics<arbitrary>], iteration_bounds = array<i64: 2, 1>, scalar_prefetch = 0 : i64, scratch_operands = 1 : i64, tpu.core_type = #tpu.core_type<tc>, window_params = [{transform_indices = @transform_0, window_bounds = array<i64: 1, 4, 256>}, {transform_indices = @transform_1, window_bounds = array<i64: 1, 4, 256>}, {transform_indices = @transform_2, window_bounds = array<i64: 1, 1, 128>}]} {
    %c0_i32 = arith.constant 0 : i32
    %0 = arith.cmpi eq, %arg1, %c0_i32 : i32
    %1 = arith.extui %0 : i1 to i32
    %c0_i32_0 = arith.constant 0 : i32
    %2 = arith.cmpi ne, %1, %c0_i32_0 : i32
    scf.if %2 {
      %cst_19 = arith.constant 0.000000e+00 : f32
      %33 = vector.broadcast %cst_19 : f32 to vector<1x256xf32>
      %c0_20 = arith.constant 0 : index
      %c0_21 = arith.constant 0 : index
      %34 = vector.load %arg5[%c0_20, %c0_21] : memref<1x256xf32, #tpu.memory_space<vmem>>, vector<1x256xf32>
      tpu.vector_store %arg5[%c0_20, %c0_21], %33 {strides = array<i32>} : memref<1x256xf32, #tpu.memory_space<vmem>>, vector<1x256xf32>,
    } else {
    }
    %c0 = arith.constant 0 : index
    %c0_1 = arith.constant 0 : index
    %c0_2 = arith.constant 0 : index
    %3 = vector.load %arg2[%c0, %c0_1, %c0_2] : memref<1x4x256xf32, #tpu.memory_space<vmem>>, vector<1x4x256xf32>
    %c0_3 = arith.constant 0 : index
    %c0_4 = arith.constant 0 : index
    %c0_5 = arith.constant 0 : index
    %4 = vector.load %arg3[%c0_3, %c0_4, %c0_5] : memref<1x4x256xf32, #tpu.memory_space<vmem>>, vector<1x4x256xf32>
    %5 = arith.mulf %3, %4 : vector<1x4x256xf32>
    %cst = arith.constant dense<0.000000e+00> : vector<1x256xf32>
    %6 = vector.multi_reduction <add>, %5, %cst [1] : vector<1x4x256xf32> to vector<1x256xf32>
    %7 = arith.mulf %3, %3 : vector<1x4x256xf32>
    %cst_6 = arith.constant dense<0.000000e+00> : vector<1x256xf32>
    %8 = vector.multi_reduction <add>, %7, %cst_6 [1] : vector<1x4x256xf32> to vector<1x256xf32>
    %9 = arith.mulf %4, %4 : vector<1x4x256xf32>
    %cst_7 = arith.constant dense<0.000000e+00> : vector<1x256xf32>
    %10 = vector.multi_reduction <add>, %9, %cst_7 [1] : vector<1x4x256xf32> to vector<1x256xf32>
    %11 = arith.mulf %8, %10 : vector<1x256xf32>
    %cst_8 = arith.constant 9.99999993E-9 : f32
    %cst_9 = arith.constant 9.99999993E-9 : f32
    %12 = arith.mulf %cst_8, %cst_9 : f32
    %13 = vector.broadcast %12 : f32 to vector<1x256xf32>
    %14 = arith.maximumf %11, %13 : vector<1x256xf32>
    %15 = math.rsqrt %14 : vector<1x256xf32>
    %16 = arith.mulf %6, %15 : vector<1x256xf32>
    %cst_10 = arith.constant 1.000000e+00 : f32
    %17 = vector.broadcast %cst_10 : f32 to vector<1x256xf32>
    %18 = arith.subf %17, %16 : vector<1x256xf32>
    %c256_i32 = arith.constant 256 : i32
    %19 = arith.muli %arg1, %c256_i32 : i32
    %20 = tpu.iota {dimensions = array<i32: 1>} : vector<1x256xi32>
    %21 = vector.broadcast %19 : i32 to vector<1x256xi32>
    %22 = arith.addi %21, %20 : vector<1x256xi32>
    %c256_i32_11 = arith.constant 256 : i32
    %23 = vector.broadcast %c256_i32_11 : i32 to vector<1x256xi32>
    %24 = arith.cmpi slt, %22, %23 : vector<1x256xi32>
    %cst_12 = arith.constant 0.000000e+00 : f32
    %25 = vector.broadcast %cst_12 : f32 to vector<1x256xf32>
    %26 = arith.select %24, %18, %25 : vector<1x256xi1>, vector<1x256xf32>
    %c0_13 = arith.constant 0 : index
    %c0_14 = arith.constant 0 : index
    %27 = vector.load %arg5[%c0_13, %c0_14] : memref<1x256xf32, #tpu.memory_space<vmem>>, vector<1x256xf32>
    %28 = arith.addf %27, %26 : vector<1x256xf32>
    %c0_15 = arith.constant 0 : index
    %c0_16 = arith.constant 0 : index
    %29 = vector.load %arg5[%c0_15, %c0_16] : memref<1x256xf32, #tpu.memory_space<vmem>>, vector<1x256xf32>
    tpu.vector_store %arg5[%c0_15, %c0_16], %28 {strides = array<i32>} : memref<1x256xf32, #tpu.memory_space<vmem>>, vector<1x256xf32>,
    %c0_i32_17 = arith.constant 0 : i32
    %30 = arith.cmpi eq, %arg1, %c0_i32_17 : i32
    %31 = arith.extui %30 : i1 to i32
    %c0_i32_18 = arith.constant 0 : i32
    %32 = arith.cmpi ne, %31, %c0_i32_18 : i32
    scf.if %32 {
      %c0_19 = arith.constant 0 : index
      %c0_20 = arith.constant 0 : index
      %33 = vector.load %arg5[%c0_19, %c0_20] : memref<1x256xf32, #tpu.memory_space<vmem>>, vector<1x256xf32>
      %34 = vector.shape_cast %33 : vector<1x256xf32> to vector<1x1x256xf32>
      %cst_21 = arith.constant dense<0.000000e+00> : vector<1xf32>
      %35 = vector.multi_reduction <add>, %34, %cst_21 [1, 2] : vector<1x1x256xf32> to vector<1xf32>
      %36 = vector.shape_cast %35 : vector<1xf32> to vector<1x1x1xf32>
      %37 = vector.extract %36[0, 0, 0] : f32 from vector<1x1x1xf32>
      %38 = vector.broadcast %37 : f32 to vector<1x1x128xf32>
      %c0_22 = arith.constant 0 : index
      %c0_23 = arith.constant 0 : index
      %c0_24 = arith.constant 0 : index
      %39 = vector.load %arg4[%c0_22, %c0_23, %c0_24] : memref<1x1x128xf32, #tpu.memory_space<vmem>>, vector<1x1x128xf32>
      tpu.vector_store %arg4[%c0_22, %c0_23, %c0_24], %38 {strides = array<i32>} : memref<1x1x128xf32, #tpu.memory_space<vmem>>, vector<1x1x128xf32>,
    } else {
    }
    return
  }
  func.func @transform_0(%arg0: i32, %arg1: i32) -> (i32, i32, i32) {
    %c0_i32 = arith.constant 0 : i32
    %c0_i32_0 = arith.constant 0 : i32
    return %arg0, %c0_i32, %arg1 : i32, i32, i32
  }
  func.func @transform_1(%arg0: i32, %arg1: i32) -> (i32, i32, i32) {
    %c0_i32 = arith.constant 0 : i32
    %c0_i32_0 = arith.constant 0 : i32
    return %arg0, %c0_i32, %arg1 : i32, i32, i32
  }
  func.func @transform_2(%arg0: i32, %arg1: i32) -> (i32, i32, i32) {
    %c0_i32 = arith.constant 0 : i32
    %c0_i32_0 = arith.constant 0 : i32
    %c0_i32_1 = arith.constant 0 : i32
    return %arg0, %c0_i32, %c0_i32_0 : i32, i32, i32
  }
}

</mosaic_0001>

<bundles_post_ra>
// kernel: tpu_custom_call.1
= control target key start
LH: loop header
LB: loop body
LE: loop exit
PB: predicated region body
PF: predicated region fallthrough
CT: control target
= control target key end

     0   :  { %7 = vsyncpa [#allocation4], 0  ;;  %s975_s0 = inlined_call_operand.hbm [shape: f32[2,4,256], index: 0, kind: input, shape index: {}]   ;;  %s976_s1 = inlined_call_operand.hbm [shape: f32[2,4,256], index: 1, kind: input, shape index: {}]   ;;  %s977_s2 = inlined_call_operand.hbm [shape: f32[2,1,128], index: 2, kind: output, shape index: {}]  }
   0x1   :  { %9 = vsyncpa [#allocation4 + $0x1], 0 }
   0x2   :  { %10 = vsyncpa [#allocation7], 0 }
   0x3   :  { %12 = vsyncpa [#allocation7 + $0x1], 0 }
   0x4   :  { %13 = vsyncpa [#allocation5], 0 }
   0x5   :  { %15 = vsyncpa [#allocation5 + $0x1], 0  ;;  %s738_s9 = smov 0   ;;  %s740_s10 = smov 0  }
   0x6   :  { %s742_s11 = smov 0   ;;  %s744_s12 = smov 0  }
   0x7   :  { %s746_s13 = smov 0   ;;  %s748_s14 = smov 0  }
   0x8 LB: > { %s477_s15 = sadd.s32 4294967295, %s716_s14   ;;  %s478_s16 = sadd.s32 4294967294, %s716_s14   ;;  %s716_s14 = sphi %s748_s14, %s21_s14   ;;  %s712_s13 = sphi %s746_s13, %s999_s13   ;;  %s708_s12 = sphi %s744_s12, %s998_s12   ;;  %s704_s11 = sphi %s742_s11, %s997_s11   ;;  %s700_s10 = sphi %s740_s10, %s996_s10   ;;  %s696_s9 = sphi %s738_s9, %s995_s9  }
   0x9   : > { %s33_s17 = sadd.s32 1, %s712_s13  ;;  %s42_s18 = sadd.s32 1, %s704_s11 }
   0xa   : > { %p35_p0 = scmp.ge.s32.totalorder %s33_s17, 2  ;;  %p49_p1 = scmp.ne.s32.totalorder %s704_s11, %s700_s10 }
   0xb   : > { %p50_p2 = scmp.eq.s32.totalorder %s716_s14, 0  ;;  %p55_p3 = scmp.ne.s32.totalorder %s700_s10, %s696_s9 }
   0xc   : > { %s1001_s17 = smov (%p35_p0, %s33_s17), 0  ;;  %p56_p5 = scmp.eq.s32.totalorder %s477_s15, 0 }
   0xd   : > { %p779_p4 = por %p50_p2, %p49_p1  ;;  %s37_s20 = ssub.s32 %s712_s13, %s1001_s17 }
   0xe   : > { %p107_p6 = scmp.eq.s32.totalorder %s477_s15, 1  ;;  %p40_p7 = scmp.eq.s32.totalorder %s37_s20, 0 }
   0xf   : > { %p785_p8 = por %p56_p5, %p55_p3  ;;  %p113_p10 = scmp.eq.s32.totalorder %s478_s16, 1 }
  0x10   : > { %p789_p9 = por %p107_p6, %p49_p1  ;;  %p514_p13 = scmp.lt.s32.totalorder %s716_s14, 2 }
  0x11   : > { %s981_s21 = scalar_select %p785_p8, 1, 0 }
  0x12   : > { %s982_s22 = scalar_select %p789_p9, 1, 0 }
  0x13   : > { %s794_s23 = scalar_select %p40_p7, %s704_s11, %s42_s18  }
  0x14   : > { %p796_p11 = por %p113_p10, %p55_p3  ;;  %s803_s25 = sand.u32 1, %s704_s11  }
  0x15   : > { %s481_s26 = sshll.u32 %s803_s25, 3  ;;  %s493_s27 = sshll.u32 %s712_s13, 7 }
  0x16   : > { %s983_s24 = scalar_select %p796_p11, 1, 0 }
  0x17   : > { %s812_s30 = scalar_lea.hbm %s975_s0, %s493_s27  ;;  %s137_s3 = scalar_lea.vmem [#allocation3], %s481_s26 }
  0x18   : > { %s147_s4 = sshll.u32 %s137_s3, 4  ;;  %p820_p0 = pnand %p514_p13, %p779_p4  ;;  %s816_s4 = int_to_ptr.vmem [resolvable:$true] %s147_s4 }
  0x19   : > { %s134_s6 = scalar_lea.sflag [#allocation4], %s803_s25  ;;  %s570_s7 = scalar_lea.hbm %s812_s30, 128 }
  0x1a   : > { %p571_p3 = scmp.ne.s32.totalorder %s812_s30, %s570_s7  ;;  %p572_p5 = pneg %p820_p0 }
  0x1b   : > { %s575_s16 = scalar_lea.hbm %s975_s0, 256  ;;  %p576_p4 = scmp.lt.u32.totalorder %s812_s30, %s975_s0 }
  0x1c   : > { %p573_p6 = pnand %p572_p5, %p571_p3  ;;  %p577_p10 = scmp.lt.u32.totalorder %s575_s16, %s570_s7 }
  0x1d   : > { %p579_p12 = scmp.lt.u32.totalorder %s570_s7, %s812_s30 }
  0x1e   : > { %p574_p7 = pneg %p573_p6  ;;  %p578_p13 = por %p577_p10, %p576_p4 }
  0x20   : > { %p580_p1 = por %p579_p12, %p578_p13 }
  0x22   : > { %p581_p2 = pnand %p580_p1, %p574_p7 }
  0x24   : > { %584 = shalt.err (!%p581_p2)
}
  0x25   : > { %s585_s20 = scalar_lea.vmem %s816_s4, 128  ;;  %s718_s28 = smov [#allocation3]  }
  0x26   : > { %p586_p3 = scmp.ne.s32.totalorder %s816_s4, %s585_s20  ;;  %s590_s29 = sshll.u32 %s718_s28, 4  ;;  %s591_s29 = int_to_ptr.vmem [resolvable:$false] %s590_s29 }
  0x27   : > { %s592_s3 = scalar_lea.vmem %s591_s29, 256  ;;  %p593_p9 = scmp.lt.s32.totalorder %s816_s4, %s591_s29 }
  0x28   : > { %p588_p6 = pnand %p586_p3, %p572_p5  ;;  %p594_p4 = scmp.lt.s32.totalorder %s592_s3, %s585_s20 }
  0x2a   : > { %p589_p11 = pneg %p588_p6  ;;  %p595_p10 = por %p594_p4, %p593_p9 }
  0x2c   : > { %p596_p12 = pnand %p595_p10, %p589_p11 }
  0x2e   : > { %599 = shalt.err (!%p596_p12)
}
  0x2f   : > { %506 = dma.hbm_to_vmem [thread:$0]  (!%p820_p0), %s812_s30, 128, %s816_s4, %s134_s6  }
  0x30   : > { %p985_p1 = scmp.lt.s32.totalorder %s716_s14, 3  ;;  %p986_p2 = scmp.ge.s32.totalorder %s716_s14, 1 }
  0x31   : > { %s865_s16 = scalar_lea.hbm %s976_s1, %s493_s27  ;;  %s158_s18 = scalar_lea.vmem [#allocation6], %s481_s26 }
  0x32   : > { %p856_p7 = pnand %p986_p2, %p985_p1  ;;  %s168_s19 = sshll.u32 %s158_s18, 4  ;;  %s169_s19 = int_to_ptr.vmem [resolvable:$true] %s168_s19 }
  0x33   : > { %s155_s30 = scalar_lea.sflag [#allocation7], %s803_s25  ;;  %s600_s4 = scalar_lea.hbm %s865_s16, 128 }
  0x34   : > { %s987_s7 = scalar_select %p856_p7, 1, 0 }
  0x35   : > { %p601_p9 = scmp.ne.s32.totalorder %s865_s16, %s600_s4  ;;  %s605_s27 = scalar_lea.hbm %s976_s1, 256 }
  0x36   : > { %p606_p3 = scmp.lt.u32.totalorder %s865_s16, %s976_s1  ;;  %p607_p6 = scmp.lt.u32.totalorder %s605_s27, %s600_s4 }
  0x37   : > { %p603_p11 = pnand %p601_p9, %p572_p5  ;;  %p609_p10 = scmp.lt.u32.totalorder %s600_s4, %s865_s16 }
  0x38   : > { %p608_p4 = por %p607_p6, %p606_p3 }
  0x39   : > { %p604_p13 = pneg %p603_p11 }
  0x3a   : > { %p610_p12 = por %p609_p10, %p608_p4 }
  0x3c   : > { %p611_p1 = pnand %p610_p12, %p604_p13 }
  0x3e   : > { %614 = shalt.err (!%p611_p1)
}
  0x3f   : > { %s615_s25 = scalar_lea.vmem %s169_s19, 128  ;;  %s719_s26 = smov [#allocation6]  }
  0x40   : > { %p616_p2 = scmp.ne.s32.totalorder %s169_s19, %s615_s25  ;;  %s620_s3 = sshll.u32 %s719_s26, 4  ;;  %s621_s3 = int_to_ptr.vmem [resolvable:$false] %s620_s3 }
  0x41   : > { %s622_s8 = scalar_lea.vmem %s621_s3, 256  ;;  %p623_p8 = scmp.lt.s32.totalorder %s169_s19, %s621_s3 }
  0x42   : > { %p618_p9 = pnand %p616_p2, %p572_p5  ;;  %p624_p7 = scmp.lt.s32.totalorder %s622_s8, %s615_s25 }
  0x44   : > { %p619_p11 = pneg %p618_p9  ;;  %p625_p3 = por %p624_p7, %p623_p8 }
  0x46   : > { %p626_p6 = pnand %p625_p3, %p619_p11 }
  0x48   : > { %629 = shalt.err (!%p626_p6)
}
  0x49   : > { %509 = dma.hbm_to_vmem [thread:$0]  (!%p820_p0), %s865_s16, 128, %s169_s19, %s155_s30  }
  0x4a   : > { %p988_p13 = scmp.ne.s32.totalorder %s987_s7, 0 }
  0x4b   : > { %s892_s15 = sand.u32 (!%p988_p13), 1, %s700_s10   ;;  %p989_p5 = scmp.ne.s32.totalorder (!%p988_p13), %s981_s21, 0 }
  0x4c   : > { %177 = sbr.rel (%p988_p13) target bundleno = 364 (0x16c), region = 28  ;;  %s488_s18 = sshll.u32 (!%p988_p13), %s892_s15, 3 }
  0x4d   : > { %s180_s4 = scalar_lea.sflag (!%p988_p13), [#allocation4], %s892_s15  ;;  %s183_s6 = scalar_lea.vmem (!%p988_p13), [#allocation3], %s488_s18 }
  0x53   : > { %683 = dma.done.wait (%p989_p5), %s180_s4, 128  }
  0x54   : > { %685 = vsyncadd (%p989_p5), %s180_s4, 4294967168  ;;  %s189_s5 = scalar_lea.sflag [#allocation7], %s892_s15  ;;  %s192_s16 = scalar_lea.vmem [#allocation6], %s488_s18 }
  0x55   : > { %687 = dma.done.wait (%p989_p5), %s189_s5, 128  }
  0x56   : > { %689 = vsyncadd (%p989_p5), %s189_s5, 4294967168  ;;  %v223_v0 = vlaneseq  ;;  %v720_v2 = vmov 0.0   ;;  %v228_v3 = vld [vmem:[%s183_s6] sm:$0xff]  ;;  %v229_v4 = vld [vmem:[%s192_s16] sm:$0xff]  ;;  %vm234_vm1 = vcmask 1043456   ;;  %vm346_vm2 = vcmask 1040384  }
  0x57   : > { %v230_v5 = vmul.f32 %v229_v4, %v228_v3  ;;  %v249_v6 = vmul.f32 %v228_v3, %v228_v3  ;;  %v267_v7 = vmul.f32 %v229_v4, %v229_v4  ;;  %v721_v56 = vmov 1966171168   ;;  %s216_s21 = scalar_lea.vmem [#allocation8], %s892_s15  ;;  %s490_s19 = sshll.u32 %s708_s12, 4 }
  0x58   : > { %vm906_vm0 = vcmp.lt.s32.totalorder %v223_v0, 256  ;;  %v311_v57 = vunpack.c.l.s4 %v721_v56  ;;  %v314_v62 = vshrl.u32 %v223_v0, 7  ;;  %s374_s7 = sshll.u32 %s216_s21, 4  ;;  %s928_s28 = scalar_lea.hbm %s977_s2, %s490_s19  ;;  %s923_s7 = int_to_ptr.vmem [resolvable:$true] %s374_s7 }
  0x59   : > { %227 = vst.msk [vmem:[#allocation2] sm:$0x3] %vm906_vm0, %v720_v2  ;;  %v251_v8 = vcombine.high %v249_v6, %v249_v6  ;;  %v253_v9 = vsel %vm234_vm1, %v249_v6, 0.0  ;;  %v269_v11 = vcombine.high %v267_v7, %v267_v7  ;;  %v271_v12 = vsel %vm234_vm1, %v267_v7, 0.0  ;;  %s362_s29 = scalar_lea.sflag [#allocation5], %s892_s15  ;;  %s630_s25 = scalar_lea.vmem %s923_s7, 16 }
  0x5a   : > { %v254_v10 = vrot.slane %v253_v9, 4  ;;  %v232_v13 = vcombine.high %v230_v5, %v230_v5  ;;  %v235_v14 = vsel %vm234_vm1, %v230_v5, 0.0  ;;  %v272_v16 = vrot.slane %v271_v12, 4  ;;  %p631_p8 = scmp.ne.s32.totalorder %s923_s7, %s630_s25  ;;  %p992_p0 = scmp.ne.s32.totalorder %s982_s22, 0 }
  0x5b   : > { %v260_v15 = vsel %vm234_vm1, %v251_v8, 0.0  ;;  %v278_v20 = vsel %vm234_vm1, %v269_v11, 0.0  ;;  %v236_v21 = vrot.slane %v235_v14, 4  ;;  %v312_v61 = vunpack.c.0.s8 %v311_v57  ;;  %s722_s12 = smov [#allocation8]  }
  0x5c   : > { %v255_v17 = vadd.f32 %v254_v10, %v253_v9  ;;  %v261_v18 = vrot.slane %v260_v15, 4  ;;  %v273_v19 = vadd.f32 %v272_v16, %v271_v12  ;;  %v242_v24 = vsel %vm234_vm1, %v232_v13, 0.0  ;;  %p632_p7 = pnand %p631_p8, %p992_p0  ;;  %s634_s26 = sshll.u32 %s722_s12, 4  ;;  %s635_s26 = int_to_ptr.vmem [resolvable:$false] %s634_s26 }
  0x5d   : > { %v279_v26 = vrot.slane %v278_v20, 4  ;;  %v237_v31 = vadd.f32 %v236_v21, %v235_v14  ;;  %v243_v32 = vrot.slane %v242_v24, 4  ;;  %v315_v5 = vsub.s32 %v312_v61, %v314_v62  ;;  %s636_s3 = scalar_lea.vmem %s635_s26, 32  ;;  %p637_p10 = scmp.lt.s32.totalorder %s923_s7, %s635_s26 }
  0x5e   : > { %v256_v22 = vrot.slane %v255_v17, 2  ;;  %v262_v23 = vadd.f32 %v261_v18, %v260_v15  ;;  %v274_v25 = vrot.slane %v273_v19, 2  ;;  %v338_v11 = vsub.s32 0, %v314_v62  ;;  %p633_p4 = pneg %p632_p7  ;;  %p638_p12 = scmp.lt.s32.totalorder %s636_s3, %s630_s25 }
  0x5f   : > { %v280_v30 = vadd.f32 %v279_v26, %v278_v20  ;;  %v238_v41 = vrot.slane %v237_v31, 2  ;;  %v244_v42 = vadd.f32 %v243_v32, %v242_v24  ;;  %v342_v12 = vsub.s32 1, %v314_v62 }
  0x60   : > { %v257_v27 = vadd.f32 %v256_v22, %v255_v17  ;;  %v263_v28 = vrot.slane %v262_v23, 2  ;;  %v275_v29 = vadd.f32 %v274_v25, %v273_v19  ;;  %v306_v8 = vld [vmem:[#allocation2] sm:$0x3]  ;;  %p639_p1 = por %p638_p12, %p637_p10 }
  0x61   : > { %v281_v36 = vrot.slane %v280_v30, 2  ;;  %v239_v48 = vadd.f32 %v238_v41, %v237_v31  ;;  %v245_v49 = vrot.slane %v244_v42, 2 }
  0x62   : > { %v258_v33 = vrot.slane %v257_v27, 1  ;;  %v264_v34 = vadd.f32 %v263_v28, %v262_v23  ;;  %v276_v35 = vrot.slane %v275_v29, 1  ;;  %p640_p2 = pnand %p639_p1, %p633_p4 }
  0x63   : > { %v282_v40 = vadd.f32 %v281_v36, %v280_v30  ;;  %v240_v52 = vrot.slane %v239_v48, 1  ;;  %v246_v53 = vadd.f32 %v245_v49, %v244_v42 }
  0x64   : > { %v259_v37 = vadd.f32 %v258_v33, %v257_v27  ;;  %v265_v38 = vrot.slane %v264_v34, 1  ;;  %v277_v39 = vadd.f32 %v276_v35, %v275_v29 }
  0x65   : > { %v283_v44 = vrot.slane %v282_v40, 1  ;;  %v241_v54 = vadd.f32 %v240_v52, %v239_v48  ;;  %v247_v55 = vrot.slane %v246_v53, 1 }
  0x66   : > { %v266_v43 = vadd.f32 %v265_v38, %v264_v34  ;;  %v285_v45 = vmul.f32 %v277_v39, %v259_v37 }
  0x67   : > { %v284_v46 = vadd.f32 %v283_v44, %v282_v40  ;;  %v248_v59 = vadd.f32 %v247_v55, %v246_v53 }
  0x68   : > { %v287_v47 = vmax.f32 %v285_v45, 1e-16 }
  0x69   : > { %v286_v50 = vmul.f32 %v284_v46, %v266_v43 }
  0x6a   : > { %566 = vrsqrt.f32 %v287_v47 }
  0x6b   : > { %v288_v51 = vmax.f32 %v286_v50, 1e-16 }
  0x6d   : > { %568 = vrsqrt.f32 %v288_v51 }
  0x74   : > { %v567_v58 = vpop.eup %566 }
  0x75   : > { %v291_v60 = vmul.f32 %v567_v58, %v241_v54 }
  0x77   : > { %v569_v63 = vpop.eup %568  ;;  %v293_v3 = vsub.f32 1.0, %v291_v60 }
  0x78   : > { %v292_v2 = vmul.f32 %v569_v63, %v248_v59 }
  0x7a   : > { %v294_v4 = vsub.f32 1.0, %v292_v2 }
  0x7c   : > { %v309_v6 = vcombine.low %v293_v3, %v294_v4 }
  0x7e   : > { %v316_v7 = vrot.slane %v309_v6, %v315_v5 }
  0x80   : > { %v323_v9 = vrot.slane %v316_v7, %v315_v5 }
  0x82   : > { %v325_v10 = vadd.f32 %v323_v9, %v306_v8 }
  0x84   : > { %330 = vst.msk [vmem:[#allocation2] sm:$0x3] %vm906_vm0, %v325_v10 }
  0x8b   : > { %v334_v13 = vld [vmem:[#allocation2] sm:$0x3] }
  0x8c   : > { %v339_v14 = vrot.slane %v334_v13, %v338_v11  ;;  %v343_v0 = vrot.slane %v334_v13, %v342_v12 }
  0x8e   : > { %v347_v15 = vsel %vm346_vm2, %v339_v14, 0.0  ;;  %v348_v16 = vsel %vm346_vm2, %v343_v0, 0.0 }
  0x8f   : > { %v349_v17 = vadd.f32 %v348_v16, %v347_v15 }
  0x91   : > { %350 = vadd.xlane.f32.xlu0 %v349_v17 }
 0x11e   : > { %v351_v18 = vpop.xlane.xlu0 %350 }
 0x11f   : > { %v352_v19 = vrot.slane %v351_v18, 4 }
 0x121   : > { %v353_v20 = vadd.f32 %v352_v19, %v351_v18 }
 0x123   : > { %v354_v21 = vrot.slane %v353_v20, 2 }
 0x125   : > { %v355_v1 = vadd.f32 %v354_v21, %v353_v20 }
 0x127   : > { %v356_v22 = vrot.slane %v355_v1, 1 }
 0x129   : > { %v357_v23 = vadd.f32 %v356_v22, %v355_v1 }
 0x12b   : > { %495 = vpush %v357_v23 }
 0x15c   : > { %s496_s30 = spop %495 }
 0x15d   : > { %v359_v24 = vstv %s496_s30 }
 0x15e   : > { %360 = vst [vmem:[%s216_s21] sm:$0x1] %v359_v24 }
 0x15f   : > { %643 = shalt.err (!%p640_p2)
}
 0x160   : > { %s644_s8 = scalar_lea.hbm %s928_s28, 16  ;;  %s648_s4 = scalar_lea.hbm %s977_s2, 32 }
 0x161   : > { %p645_p9 = scmp.ne.s32.totalorder %s928_s28, %s644_s8  ;;  %p649_p6 = scmp.lt.u32.totalorder %s928_s28, %s977_s2 }
 0x162   : > { %p650_p13 = scmp.lt.u32.totalorder %s648_s4, %s644_s8  ;;  %p652_p8 = scmp.lt.u32.totalorder %s644_s8, %s928_s28 }
 0x163   : > { %p646_p11 = pnand %p645_p9, %p992_p0 }
 0x164   : > { %p651_p5 = por %p650_p13, %p649_p6 }
 0x165   : > { %p647_p3 = pneg %p646_p11 }
 0x166   : > { %p653_p7 = por %p652_p8, %p651_p5 }
 0x168   : > { %p654_p4 = pnand %p653_p7, %p647_p3 }
 0x16a   : > { %657 = shalt.err (!%p654_p4)
}
 0x16b   : > { %501 = dma.vmem_to_hbm [thread:$0]  (%p992_p0), %s923_s7, 16, %s928_s28, %s362_s29  }
 0x16c PF: > { %s386_s16 = sand.u32 1, %s696_s9   ;;  %p993_p10 = scmp.ne.s32.totalorder %s983_s24, 0 }
 0x16d   : > { %p994_p12 = scmp.ge.s32.totalorder %s716_s14, 2  ;;  %s387_s21 = scalar_lea.sflag [#allocation5], %s386_s16 }
 0x16f   : > { %p511_p1 = pnand %p994_p12, %p993_p10 }
 0x171   : > { %691 = dma.done.wait (!%p511_p1), %s387_s21, 16  }
 0x172   : > { %693 = vsyncadd (!%p511_p1), %s387_s21, 4294967280  ;;  %s21_s14 = sadd.s32 1, %s716_s14   ;;  %s995_s9 = smov %s700_s10 }
 0x173   : > { %p18_p2 = scmp.ge.s32.totalorder %s21_s14, 4   ;;  %s996_s10 = smov %s704_s11 }
 0x174   : > { %s997_s11 = smov %s794_s23  ;;  %s998_s12 = smov %s712_s13 }
 0x175   : > { %s999_s13 = smov %s1001_s17  ;;  %20 = sbr.rel (!%p18_p2) target bundleno = 8 (0x8), region = 94 }
 0x17c   :  { %391 = vsyncpa [#allocation4], 1 }
 0x17d   :  { %393 = vsyncpa [#allocation4 + $0x1], 1 }
 0x17e   :  { %394 = vsyncpa [#allocation7], 1 }
 0x17f   :  { %396 = vsyncpa [#allocation7 + $0x1], 1 }
 0x180   :  { %397 = vsyncpa [#allocation5], 1 }
 0x181   :  { %399 = vsyncpa [#allocation5 + $0x1], 1 }

</bundles_post_ra>
